<compile_context>
chip_gen: v5e
topology: v5e:2x2
jax: 0.10.0
libtpu: 0.0.40
codegen_flags: <defaults>
</compile_context>

<pallas_src>
import functools

import jax
import jax.numpy as jnp
from jax import lax
from jax.experimental import pallas as pl
from jax.experimental.pallas import tpu as pltpu
import numpy as np


_INT32_MIN = int(np.iinfo(np.int32).min)
_INT32_MAX = int(np.iinfo(np.int32).max)
_NEG_SENTINEL = np.float32(-1e30)   # stands in for torch's -inf on positives


def _round_up(x, m):
    return (x + m - 1) // m * m


def _float_to_ordered_int(x):
    """Order-preserving f32 -> i32 bit map: x < y  <=>  key(x) < key(y)."""
    b = pltpu.bitcast(x, jnp.int32)
    return jnp.where(b < 0, b ^ jnp.int32(0x7FFFFFFF), b)


def _multibox_row_kernel(conf_ref, ploc_ref, labels_ref, gloc_ref, out_ref,
                         *, neg_pos_ratio, idx_iters):
    """One batch row per grid step.  Priors P live on the lane axis."""
    conf = conf_ref[0].astype(jnp.float32)      # (C, P) classes x priors
    labels = labels_ref[0]                      # (1, P) int32
    C, P = conf.shape

    # ---- log-sum-exp over classes (sublane axis); fully lane-dense ---------
    m = jnp.max(conf, axis=0, keepdims=True)                          # (1, P)
    lse = m + jnp.log(jnp.sum(jnp.exp(conf - m), axis=0, keepdims=True))
    bg_loss = lse - conf[0:1, :]                # == -log_softmax(conf)[..., 0]

    # gather conf[label] via one-hot select over the class (sublane) axis.
    # NOTE: labels outside [0, C) silently contribute 0 (assumed valid).
    cls_iota = lax.broadcasted_iota(jnp.int32, (C, P), 0)
    label_logit = jnp.sum(jnp.where(labels == cls_iota, conf, 0.0),
                          axis=0, keepdims=True)                      # (1, P)
    ce = lse - label_logit                      # per-prior cross entropy

    pos_mask = labels > 0                                             # (1, P)
    num_pos = jnp.sum(pos_mask.astype(jnp.int32))                     # i32
    num_neg = num_pos * jnp.int32(neg_pos_ratio)                      # i32

    masked_loss = jnp.where(pos_mask, _NEG_SENTINEL, bg_loss)         # (1, P)
    key = _float_to_ordered_int(masked_loss)                          # (1, P)

    # ---- hard-negative mining: k-th-largest threshold selection ------------
    # thr = key of the num_neg-th largest masked_loss, found by an exact
    # binary search over the 32-bit ordered key (32 lane-dense count passes).
    k = jnp.maximum(num_neg, jnp.int32(1))

    def bisect_body(_, carry):
        lo, hi = carry
        # overflow-safe floor((lo + hi) / 2)
        mid = (lo >> 1) + (hi >> 1) + (lo & hi & jnp.int32(1))
        g = jnp.sum((key > mid).astype(jnp.int32))
        active = lo < hi
        hi = jnp.where(active & (g < k), mid, hi)
        lo = jnp.where(active & (g >= k), mid + jnp.int32(1), lo)
        return lo, hi

    thr, _ = lax.fori_loop(0, 32, bisect_body,
                           (jnp.int32(_INT32_MIN), jnp.int32(_INT32_MAX)))

    cnt_gt = jnp.sum((key > thr).astype(jnp.int32))
    remaining = num_neg - cnt_gt            # tied slots to take, lowest index
    tied = key == thr
    lane_idx = lax.broadcasted_iota(jnp.int32, (1, P), 1)

    # index cutoff among ties -> reproduces the stable double-argsort order.
    def tie_body(_, carry):
        lo, hi = carry
        mid = (lo + hi) >> 1
        c = jnp.sum((tied & (lane_idx <= mid)).astype(jnp.int32))
        active = lo < hi
        hi = jnp.where(active & (c >= remaining), mid, hi)
        lo = jnp.where(active & (c < remaining), mid + jnp.int32(1), lo)
        return lo, hi

    idx_cut, _ = lax.fori_loop(0, idx_iters, tie_body,
                               (jnp.int32(0), jnp.int32(P - 1)))

    neg_mask = (key > thr) | (tied & (lane_idx <= idx_cut) & (remaining > 0))
    sel_mask = pos_mask | neg_mask

    # ---- classification: summed cross-entropy over selected priors ---------
    cls_sum = jnp.sum(jnp.where(sel_mask, ce, 0.0))

    # ---- localization: summed smooth-L1 over positive priors ---------------
    d = ploc_ref[0].astype(jnp.float32) - gloc_ref[0].astype(jnp.float32)
    ad = jnp.abs(d)
    sl1 = jnp.where(ad < 1.0, 0.5 * ad * ad, ad - 0.5)
    sl1_pp = jnp.sum(sl1, axis=0, keepdims=True)                      # (1, P)
    reg_sum = jnp.sum(jnp.where(pos_mask, sl1_pp, 0.0))

    # ---- per-row partials, one tile-aligned lane-dense (8, 128) store ------
    sub = lax.broadcasted_iota(jnp.int32, (8, 128), 0)
    out_ref[0] = jnp.where(sub == 0, reg_sum,
                 jnp.where(sub == 1, cls_sum,
                 jnp.where(sub == 2, num_pos.astype(jnp.float32), 0.0)))


class MultiboxLoss:
    """JAX/Pallas port of the SSD MultiboxLoss forward pass."""

    def __init__(self, priors, iou_threshold, neg_pos_ratio,
                 center_variance, size_variance):
        # priors / iou_threshold / variances kept only for API parity with the
        # PyTorch module; forward() does not use them.
        self.priors = priors
        self.iou_threshold = iou_threshold
        self.neg_pos_ratio = int(neg_pos_ratio)
        self.center_variance = center_variance
        self.size_variance = size_variance

    def __call__(self, confidence, predicted_locations, labels, gt_locations):
        conf = jnp.asarray(confidence)
        ploc = jnp.asarray(predicted_locations)
        gloc = jnp.asarray(gt_locations)
        if not jnp.issubdtype(conf.dtype, jnp.floating):
            conf = conf.astype(jnp.float32)
        if not jnp.issubdtype(ploc.dtype, jnp.floating):
            ploc = ploc.astype(jnp.float32)
        if not jnp.issubdtype(gloc.dtype, jnp.floating):
            gloc = gloc.astype(jnp.float32)
        lab = jnp.asarray(labels, jnp.int32)

        B, P, C = conf.shape

        # priors onto the 128-wide lane axis (no padding; full-extent blocks).
        conf_t = jnp.transpose(conf, (0, 2, 1))      # (B, C, P)
        ploc_t = jnp.transpose(ploc, (0, 2, 1))      # (B, 4, P)
        gloc_t = jnp.transpose(gloc, (0, 2, 1))      # (B, 4, P)
        lab3 = lab.reshape(B, 1, P)                  # (B, 1, P), free reshape

        kernel = functools.partial(
            _multibox_row_kernel,
            neg_pos_ratio=self.neg_pos_ratio,
            idx_iters=max(1, (P - 1).bit_length()))

        # right-sized scoped-VMEM request (double-buffered inputs + in-kernel
        # (8, P)-padded vector temporaries + slack); fits v7x 64 MiB parts.
        P128 = _round_up(P, 128)
        C8 = _round_up(C, 8)
        block_bytes = (conf_t.dtype.itemsize * C8 * P128
                       + (ploc_t.dtype.itemsize + gloc_t.dtype.itemsize) * 8 * P128
                       + 4 * 8 * P128)
        interm_bytes = 16 * 8 * P128 * 4
        vmem_limit = int(min(32 * 1024 * 1024,
                             max(4 * 1024 * 1024,
                                 2 * block_bytes + interm_bytes
                                 + 2 * 1024 * 1024)))

        partials = pl.pallas_call(
            kernel,
            out_shape=jax.ShapeDtypeStruct((B, 8, 128), jnp.float32),
            grid=(B,),
            in_specs=[
                pl.BlockSpec((1, C, P), lambda b: (b, 0, 0)),
                pl.BlockSpec((1, 4, P), lambda b: (b, 0, 0)),
                pl.BlockSpec((1, 1, P), lambda b: (b, 0, 0)),
                pl.BlockSpec((1, 4, P), lambda b: (b, 0, 0)),
            ],
            out_specs=pl.BlockSpec((1, 8, 128), lambda b: (b, 0, 0)),
            compiler_params=pltpu.CompilerParams(
                dimension_semantics=("parallel",),
                vmem_limit_bytes=vmem_limit),
        )(conf_t, ploc_t, lab3, gloc_t)

        reg_sum = jnp.sum(partials[:, 0, 0])
        cls_sum = jnp.sum(partials[:, 1, 0])
        num_pos = jnp.sum(partials[:, 2, 0])
        # Matches torch: divides by total positive count (inf/NaN if zero).
        return reg_sum / num_pos, cls_sum / num_pos


def _reference(confidence, predicted_locations, labels, gt_locations,
               neg_pos_ratio):
    """Pure-JAX reference with identical semantics (for validation)."""
    conf = confidence.astype(jnp.float32)
    B, P, C = conf.shape
    lse = jax.nn.logsumexp(conf, axis=-1)
    bg_loss = lse - conf[..., 0]

    pos_mask = labels > 0
    num_pos_b = jnp.sum(pos_mask.astype(jnp.int32), axis=-1, keepdims=True)
    num_neg_b = num_pos_b * neg_pos_ratio

    masked_loss = jnp.where(pos_mask, jnp.float32(-1e30), bg_loss)
    li = masked_loss[:, :, None]
    lj = masked_loss[:, None, :]
    i_idx = lax.broadcasted_iota(jnp.int32, (B, P, P), 1)
    j_idx = lax.broadcasted_iota(jnp.int32, (B, P, P), 2)
    rank = jnp.sum(((lj > li) | ((lj == li) & (j_idx < i_idx))).astype(jnp.int32),
                   axis=-1)
    sel_mask = pos_mask | (rank < num_neg_b)

    label_logit = jnp.take_along_axis(conf, labels[..., None], axis=-1)[..., 0]
    ce = lse - label_logit
    class_loss = jnp.sum(jnp.where(sel_mask, ce, 0.0))

    d = predicted_locations.astype(jnp.float32) - gt_locations.astype(jnp.float32)
    ad = jnp.abs(d)
    sl1 = jnp.where(ad < 1.0, 0.5 * ad * ad, ad - 0.5)
    sl1_loss = jnp.sum(jnp.where(pos_mask, jnp.sum(sl1, axis=-1), 0.0))

    num_pos = jnp.sum(num_pos_b).astype(jnp.float32)
    return sl1_loss / num_pos, class_loss / num_pos


if __name__ == "__main__":
    B, P, C = 2, 300, 8  # batch, num_priors (deliberately not 128-aligned), classes
    key = jax.random.PRNGKey(0)
    kp, k1, k2, k3, k4, k5 = jax.random.split(key, 6)

    # deterministic "priors" (kept only for API parity with the torch module)
    priors = jax.random.uniform(kp, (P, 4), jnp.float32)

    confidence = jax.random.normal(k1, (B, P, C), jnp.float32)
    predicted_locations = jax.random.normal(k2, (B, P, 4), jnp.float32)
    gt_locations = predicted_locations + 0.7 * jax.random.normal(
        k3, (B, P, 4), jnp.float32)

    pos = jax.random.uniform(k4, (B, P)) < 0.15
    cls = jax.random.randint(k5, (B, P), 1, C)
    labels = jnp.where(pos, cls, 0).astype(jnp.int32)
    labels = labels.at[:, 0].set(1)  # guarantee at least one positive per row

    loss_fn = MultiboxLoss(priors, iou_threshold=0.5, neg_pos_ratio=3,
                           center_variance=0.1, size_variance=0.2)

    reg_loss, cls_loss = loss_fn(confidence, predicted_locations, labels,
                                 gt_locations)
    reg_loss = jax.block_until_ready(reg_loss)
    cls_loss = jax.block_until_ready(cls_loss)

    ref_reg, ref_cls = _reference(confidence, predicted_locations, labels,
                                  gt_locations, neg_pos_ratio=3)

    np.testing.assert_allclose(np.asarray(reg_loss), np.asarray(ref_reg),
                               rtol=1e-4, atol=1e-4)
    np.testing.assert_allclose(np.asarray(cls_loss), np.asarray(ref_cls),
                               rtol=1e-4, atol=1e-4)

    print("KERNEL_OK")
</pallas_src>

<mosaic_0001>
module attributes {stable_mosaic.version = 11 : i64} {
  func.func @_multibox_row_kernel(%arg0: i32, %arg1: memref<1x8x300xf32, #tpu.memory_space<vmem>>, %arg2: memref<1x4x300xf32, #tpu.memory_space<vmem>>, %arg3: memref<1x1x300xi32, #tpu.memory_space<vmem>>, %arg4: memref<1x4x300xf32, #tpu.memory_space<vmem>>, %arg5: memref<1x8x128xf32, #tpu.memory_space<vmem>>) attributes {dimension_semantics = [#tpu.dimension_semantics<parallel>], iteration_bounds = array<i64: 2>, scalar_prefetch = 0 : i64, scratch_operands = 0 : i64, tpu.core_type = #tpu.core_type<tc>, window_params = [{transform_indices = @transform_0, window_bounds = array<i64: 1, 8, 300>}, {transform_indices = @transform_1, window_bounds = array<i64: 1, 4, 300>}, {transform_indices = @transform_2, window_bounds = array<i64: 1, 1, 300>}, {transform_indices = @transform_3, window_bounds = array<i64: 1, 4, 300>}, {transform_indices = @transform_4, window_bounds = array<i64: 1, 8, 128>}]} {
    %c0 = arith.constant 0 : index
    %c0_0 = arith.constant 0 : index
    %c0_1 = arith.constant 0 : index
    %0 = vector.load %arg1[%c0, %c0_0, %c0_1] : memref<1x8x300xf32, #tpu.memory_space<vmem>>, vector<1x8x300xf32>
    %1 = vector.shape_cast %0 : vector<1x8x300xf32> to vector<8x300xf32>
    %c0_2 = arith.constant 0 : index
    %c0_3 = arith.constant 0 : index
    %c0_4 = arith.constant 0 : index
    %2 = vector.load %arg3[%c0_2, %c0_3, %c0_4] : memref<1x1x300xi32, #tpu.memory_space<vmem>>, vector<1x1x300xi32>
    %3 = vector.shape_cast %2 : vector<1x1x300xi32> to vector<1x300xi32>
    %cst = arith.constant dense<0xFF800000> : vector<300xf32>
    %4 = vector.multi_reduction <maximumf>, %1, %cst [0] : vector<8x300xf32> to vector<300xf32>
    %5 = vector.shape_cast %4 : vector<300xf32> to vector<1x300xf32>
    %6 = vector.broadcast %5 : vector<1x300xf32> to vector<8x300xf32>
    %7 = arith.subf %1, %6 : vector<8x300xf32>
    %8 = math.exp %7 : vector<8x300xf32>
    %cst_5 = arith.constant dense<0.000000e+00> : vector<300xf32>
    %9 = vector.multi_reduction <add>, %8, %cst_5 [0] : vector<8x300xf32> to vector<300xf32>
    %10 = vector.shape_cast %9 : vector<300xf32> to vector<1x300xf32>
    %11 = math.log %10 : vector<1x300xf32>
    %12 = arith.addf %5, %11 : vector<1x300xf32>
    %13 = vector.extract_strided_slice %1 {offsets = [0, 0], sizes = [1, 300], strides = [1, 1]} : vector<8x300xf32> to vector<1x300xf32>
    %14 = arith.subf %12, %13 : vector<1x300xf32>
    %15 = tpu.iota {dimensions = array<i32: 0>} : vector<8x300xi32>
    %16 = vector.broadcast %3 : vector<1x300xi32> to vector<8x300xi32>
    %17 = arith.cmpi eq, %16, %15 : vector<8x300xi32>
    %cst_6 = arith.constant 0.000000e+00 : f32
    %18 = vector.broadcast %cst_6 : f32 to vector<8x300xf32>
    %19 = arith.select %17, %1, %18 : vector<8x300xi1>, vector<8x300xf32>
    %cst_7 = arith.constant dense<0.000000e+00> : vector<300xf32>
    %20 = vector.multi_reduction <add>, %19, %cst_7 [0] : vector<8x300xf32> to vector<300xf32>
    %21 = vector.shape_cast %20 : vector<300xf32> to vector<1x300xf32>
    %22 = arith.subf %12, %21 : vector<1x300xf32>
    %c0_i32 = arith.constant 0 : i32
    %23 = vector.broadcast %c0_i32 : i32 to vector<1x300xi32>
    %24 = arith.cmpi sgt, %3, %23 : vector<1x300xi32>
    %25 = arith.extui %24 : vector<1x300xi1> to vector<1x300xi32>
    %26 = vector.shape_cast %25 : vector<1x300xi32> to vector<1x1x300xi32>
    %cst_8 = arith.constant dense<0> : vector<1xi32>
    %27 = vector.multi_reduction <add>, %26, %cst_8 [1, 2] : vector<1x1x300xi32> to vector<1xi32>
    %28 = vector.shape_cast %27 : vector<1xi32> to vector<1x1x1xi32>
    %29 = vector.extract %28[0, 0, 0] : i32 from vector<1x1x1xi32>
    %c3_i32 = arith.constant 3 : i32
    %30 = arith.muli %29, %c3_i32 : i32
    %cst_9 = arith.constant -1.000000e+30 : f32
    %31 = vector.broadcast %cst_9 : f32 to vector<1x300xf32>
    %32 = arith.select %24, %31, %14 : vector<1x300xi1>, vector<1x300xf32>
    %33 = tpu.bitcast %32 : vector<1x300xf32> -> vector<1x300xi32>
    %c0_i32_10 = arith.constant 0 : i32
    %34 = vector.broadcast %c0_i32_10 : i32 to vector<1x300xi32>
    %35 = arith.cmpi slt, %33, %34 : vector<1x300xi32>
    %c2147483647_i32 = arith.constant 2147483647 : i32
    %36 = vector.broadcast %c2147483647_i32 : i32 to vector<1x300xi32>
    %37 = arith.xori %33, %36 : vector<1x300xi32>
    %38 = arith.select %35, %37, %33 : vector<1x300xi1>, vector<1x300xi32>
    %c1_i32 = arith.constant 1 : i32
    %39 = arith.maxsi %30, %c1_i32 : i32
    %c-2147483648_i32 = arith.constant -2147483648 : i32
    %c2147483647_i32_11 = arith.constant 2147483647 : i32
    %c0_i32_12 = arith.constant 0 : i32
    %c32_i32 = arith.constant 32 : i32
    %40 = arith.addi %c0_i32_12, %c32_i32 : i32
    %c1_i32_13 = arith.constant 1 : i32
    %41:2 = scf.for %arg6 = %c0_i32_12 to %40 step %c1_i32_13 iter_args(%arg7 = %c-2147483648_i32, %arg8 = %c2147483647_i32_11) -> (i32, i32)  : i32 {
      %c1_i32_39 = arith.constant 1 : i32
      %111 = arith.shrsi %arg7, %c1_i32_39 : i32
      %c1_i32_40 = arith.constant 1 : i32
      %112 = arith.shrsi %arg8, %c1_i32_40 : i32
      %113 = arith.addi %111, %112 : i32
      %114 = arith.andi %arg7, %arg8 : i32
      %c1_i32_41 = arith.constant 1 : i32
      %115 = arith.andi %114, %c1_i32_41 : i32
      %116 = arith.addi %113, %115 : i32
      %117 = vector.broadcast %116 : i32 to vector<1x300xi32>
      %118 = arith.cmpi sgt, %38, %117 : vector<1x300xi32>
      %119 = arith.extui %118 : vector<1x300xi1> to vector<1x300xi32>
      %120 = vector.shape_cast %119 : vector<1x300xi32> to vector<1x1x300xi32>
      %cst_42 = arith.constant dense<0> : vector<1xi32>
      %121 = vector.multi_reduction <add>, %120, %cst_42 [1, 2] : vector<1x1x300xi32> to vector<1xi32>
      %122 = vector.shape_cast %121 : vector<1xi32> to vector<1x1x1xi32>
      %123 = vector.extract %122[0, 0, 0] : i32 from vector<1x1x1xi32>
      %124 = arith.cmpi slt, %arg7, %arg8 : i32
      %125 = arith.cmpi slt, %123, %39 : i32
      %126 = arith.andi %124, %125 : i1
      %127 = arith.select %126, %116, %arg8 : i32
      %128 = arith.cmpi sge, %123, %39 : i32
      %129 = arith.andi %124, %128 : i1
      %c1_i32_43 = arith.constant 1 : i32
      %130 = arith.addi %116, %c1_i32_43 : i32
      %131 = arith.select %129, %130, %arg7 : i32
      scf.yield %131, %127 : i32, i32
    }
    %42 = vector.broadcast %41#0 : i32 to vector<1x300xi32>
    %43 = arith.cmpi sgt, %38, %42 : vector<1x300xi32>
    %44 = arith.extui %43 : vector<1x300xi1> to vector<1x300xi32>
    %45 = vector.shape_cast %44 : vector<1x300xi32> to vector<1x1x300xi32>
    %cst_14 = arith.constant dense<0> : vector<1xi32>
    %46 = vector.multi_reduction <add>, %45, %cst_14 [1, 2] : vector<1x1x300xi32> to vector<1xi32>
    %47 = vector.shape_cast %46 : vector<1xi32> to vector<1x1x1xi32>
    %48 = vector.extract %47[0, 0, 0] : i32 from vector<1x1x1xi32>
    %49 = arith.subi %30, %48 : i32
    %50 = vector.broadcast %41#0 : i32 to vector<1x300xi32>
    %51 = arith.cmpi eq, %38, %50 : vector<1x300xi32>
    %52 = tpu.iota {dimensions = array<i32: 1>} : vector<1x300xi32>
    %c0_i32_15 = arith.constant 0 : i32
    %c299_i32 = arith.constant 299 : i32
    %c0_i32_16 = arith.constant 0 : i32
    %c9_i32 = arith.constant 9 : i32
    %53 = arith.addi %c0_i32_16, %c9_i32 : i32
    %c1_i32_17 = arith.constant 1 : i32
    %54:2 = scf.for %arg6 = %c0_i32_16 to %53 step %c1_i32_17 iter_args(%arg7 = %c0_i32_15, %arg8 = %c299_i32) -> (i32, i32)  : i32 {
      %111 = arith.addi %arg7, %arg8 : i32
      %c1_i32_39 = arith.constant 1 : i32
      %112 = arith.shrsi %111, %c1_i32_39 : i32
      %113 = vector.broadcast %112 : i32 to vector<1x300xi32>
      %114 = arith.cmpi sle, %52, %113 : vector<1x300xi32>
      %115 = arith.andi %51, %114 : vector<1x300xi1>
      %116 = arith.extui %115 : vector<1x300xi1> to vector<1x300xi32>
      %117 = vector.shape_cast %116 : vector<1x300xi32> to vector<1x1x300xi32>
      %cst_40 = arith.constant dense<0> : vector<1xi32>
      %118 = vector.multi_reduction <add>, %117, %cst_40 [1, 2] : vector<1x1x300xi32> to vector<1xi32>
      %119 = vector.shape_cast %118 : vector<1xi32> to vector<1x1x1xi32>
      %120 = vector.extract %119[0, 0, 0] : i32 from vector<1x1x1xi32>
      %121 = arith.cmpi slt, %arg7, %arg8 : i32
      %122 = arith.cmpi sge, %120, %49 : i32
      %123 = arith.andi %121, %122 : i1
      %124 = arith.select %123, %112, %arg8 : i32
      %125 = arith.cmpi slt, %120, %49 : i32
      %126 = arith.andi %121, %125 : i1
      %c1_i32_41 = arith.constant 1 : i32
      %127 = arith.addi %112, %c1_i32_41 : i32
      %128 = arith.select %126, %127, %arg7 : i32
      scf.yield %128, %124 : i32, i32
    }
    %55 = vector.broadcast %41#0 : i32 to vector<1x300xi32>
    %56 = arith.cmpi sgt, %38, %55 : vector<1x300xi32>
    %57 = vector.broadcast %54#0 : i32 to vector<1x300xi32>
    %58 = arith.cmpi sle, %52, %57 : vector<1x300xi32>
    %59 = arith.andi %51, %58 : vector<1x300xi1>
    %c0_i32_18 = arith.constant 0 : i32
    %60 = arith.cmpi sgt, %49, %c0_i32_18 : i32
    %61 = vector.broadcast %60 : i1 to vector<1x300xi1>
    %62 = arith.andi %59, %61 : vector<1x300xi1>
    %63 = arith.ori %56, %62 : vector<1x300xi1>
    %64 = arith.ori %24, %63 : vector<1x300xi1>
    %cst_19 = arith.constant 0.000000e+00 : f32
    %65 = vector.broadcast %cst_19 : f32 to vector<1x300xf32>
    %66 = arith.select %64, %22, %65 : vector<1x300xi1>, vector<1x300xf32>
    %67 = vector.shape_cast %66 : vector<1x300xf32> to vector<1x1x300xf32>
    %cst_20 = arith.constant dense<0.000000e+00> : vector<1xf32>
    %68 = vector.multi_reduction <add>, %67, %cst_20 [1, 2] : vector<1x1x300xf32> to vector<1xf32>
    %69 = vector.shape_cast %68 : vector<1xf32> to vector<1x1x1xf32>
    %70 = vector.extract %69[0, 0, 0] : f32 from vector<1x1x1xf32>
    %c0_21 = arith.constant 0 : index
    %c0_22 = arith.constant 0 : index
    %c0_23 = arith.constant 0 : index
    %71 = vector.load %arg2[%c0_21, %c0_22, %c0_23] : memref<1x4x300xf32, #tpu.memory_space<vmem>>, vector<1x4x300xf32>
    %72 = vector.shape_cast %71 : vector<1x4x300xf32> to vector<4x300xf32>
    %c0_24 = arith.constant 0 : index
    %c0_25 = arith.constant 0 : index
    %c0_26 = arith.constant 0 : index
    %73 = vector.load %arg4[%c0_24, %c0_25, %c0_26] : memref<1x4x300xf32, #tpu.memory_space<vmem>>, vector<1x4x300xf32>
    %74 = vector.shape_cast %73 : vector<1x4x300xf32> to vector<4x300xf32>
    %75 = arith.subf %72, %74 : vector<4x300xf32>
    %76 = math.absf %75 : vector<4x300xf32>
    %cst_27 = arith.constant 1.000000e+00 : f32
    %77 = vector.broadcast %cst_27 : f32 to vector<4x300xf32>
    %78 = arith.cmpf olt, %76, %77 : vector<4x300xf32>
    %cst_28 = arith.constant 5.000000e-01 : f32
    %79 = vector.broadcast %cst_28 : f32 to vector<4x300xf32>
    %80 = arith.mulf %79, %76 : vector<4x300xf32>
    %81 = arith.mulf %80, %76 : vector<4x300xf32>
    %cst_29 = arith.constant 5.000000e-01 : f32
    %82 = vector.broadcast %cst_29 : f32 to vector<4x300xf32>
    %83 = arith.subf %76, %82 : vector<4x300xf32>
    %84 = arith.select %78, %81, %83 : vector<4x300xi1>, vector<4x300xf32>
    %cst_30 = arith.constant dense<0.000000e+00> : vector<300xf32>
    %85 = vector.multi_reduction <add>, %84, %cst_30 [0] : vector<4x300xf32> to vector<300xf32>
    %86 = vector.shape_cast %85 : vector<300xf32> to vector<1x300xf32>
    %cst_31 = arith.constant 0.000000e+00 : f32
    %87 = vector.broadcast %cst_31 : f32 to vector<1x300xf32>
    %88 = arith.select %24, %86, %87 : vector<1x300xi1>, vector<1x300xf32>
    %89 = vector.shape_cast %88 : vector<1x300xf32> to vector<1x1x300xf32>
    %cst_32 = arith.constant dense<0.000000e+00> : vector<1xf32>
    %90 = vector.multi_reduction <add>, %89, %cst_32 [1, 2] : vector<1x1x300xf32> to vector<1xf32>
    %91 = vector.shape_cast %90 : vector<1xf32> to vector<1x1x1xf32>
    %92 = vector.extract %91[0, 0, 0] : f32 from vector<1x1x1xf32>
    %93 = tpu.iota {dimensions = array<i32: 0>} : vector<8x128xi32>
    %c0_i32_33 = arith.constant 0 : i32
    %94 = vector.broadcast %c0_i32_33 : i32 to vector<8x128xi32>
    %95 = arith.cmpi eq, %93, %94 : vector<8x128xi32>
    %c1_i32_34 = arith.constant 1 : i32
    %96 = vector.broadcast %c1_i32_34 : i32 to vector<8x128xi32>
    %97 = arith.cmpi eq, %93, %96 : vector<8x128xi32>
    %c2_i32 = arith.constant 2 : i32
    %98 = vector.broadcast %c2_i32 : i32 to vector<8x128xi32>
    %99 = arith.cmpi eq, %93, %98 : vector<8x128xi32>
    %100 = arith.sitofp %29 : i32 to f32
    %cst_35 = arith.constant 0.000000e+00 : f32
    %101 = vector.broadcast %100 : f32 to vector<8x128xf32>
    %102 = vector.broadcast %cst_35 : f32 to vector<8x128xf32>
    %103 = arith.select %99, %101, %102 : vector<8x128xi1>, vector<8x128xf32>
    %104 = vector.broadcast %70 : f32 to vector<8x128xf32>
    %105 = arith.select %97, %104, %103 : vector<8x128xi1>, vector<8x128xf32>
    %106 = vector.broadcast %92 : f32 to vector<8x128xf32>
    %107 = arith.select %95, %106, %105 : vector<8x128xi1>, vector<8x128xf32>
    %c0_36 = arith.constant 0 : index
    %c0_37 = arith.constant 0 : index
    %c0_38 = arith.constant 0 : index
    %108 = vector.load %arg5[%c0_36, %c0_37, %c0_38] : memref<1x8x128xf32, #tpu.memory_space<vmem>>, vector<1x8x128xf32>
    %109 = vector.shape_cast %108 : vector<1x8x128xf32> to vector<8x128xf32>
    %110 = vector.shape_cast %107 : vector<8x128xf32> to vector<1x8x128xf32>
    tpu.vector_store %arg5[%c0_36, %c0_37, %c0_38], %110 {strides = array<i32>} : memref<1x8x128xf32, #tpu.memory_space<vmem>>, vector<1x8x128xf32>,
    return
  }
  func.func @transform_0(%arg0: i32) -> (i32, i32, i32) {
    %c0_i32 = arith.constant 0 : i32
    %c0_i32_0 = arith.constant 0 : i32
    %c0_i32_1 = arith.constant 0 : i32
    return %arg0, %c0_i32, %c0_i32_0 : i32, i32, i32
  }
  func.func @transform_1(%arg0: i32) -> (i32, i32, i32) {
    %c0_i32 = arith.constant 0 : i32
    %c0_i32_0 = arith.constant 0 : i32
    %c0_i32_1 = arith.constant 0 : i32
    return %arg0, %c0_i32, %c0_i32_0 : i32, i32, i32
  }
  func.func @transform_2(%arg0: i32) -> (i32, i32, i32) {
    %c0_i32 = arith.constant 0 : i32
    %c0_i32_0 = arith.constant 0 : i32
    %c0_i32_1 = arith.constant 0 : i32
    return %arg0, %c0_i32, %c0_i32_0 : i32, i32, i32
  }
  func.func @transform_3(%arg0: i32) -> (i32, i32, i32) {
    %c0_i32 = arith.constant 0 : i32
    %c0_i32_0 = arith.constant 0 : i32
    %c0_i32_1 = arith.constant 0 : i32
    return %arg0, %c0_i32, %c0_i32_0 : i32, i32, i32
  }
  func.func @transform_4(%arg0: i32) -> (i32, i32, i32) {
    %c0_i32 = arith.constant 0 : i32
    %c0_i32_0 = arith.constant 0 : i32
    %c0_i32_1 = arith.constant 0 : i32
    return %arg0, %c0_i32, %c0_i32_0 : i32, i32, i32
  }
}

</mosaic_0001>

<bundles_post_ra>
// kernel: tpu_custom_call.1
= control target key start
LH: loop header
LB: loop body
LE: loop exit
PB: predicated region body
PF: predicated region fallthrough
CT: control target
= control target key end

     0   :  { %s1928_s0 = inlined_call_operand.hbm [shape: f32[2,8,300], index: 0, kind: input, shape index: {}]   ;;  %s1929_s1 = inlined_call_operand.hbm [shape: f32[2,4,300], index: 1, kind: input, shape index: {}]   ;;  %s1930_s2 = inlined_call_operand.hbm [shape: s32[2,1,300], index: 2, kind: input, shape index: {}]   ;;  %s1931_s3 = inlined_call_operand.hbm [shape: f32[2,4,300], index: 3, kind: input, shape index: {}]   ;;  %s1932_s4 = inlined_call_operand.hbm [shape: f32[2,8,128], index: 4, kind: output, shape index: {}]  }
   0x1   :  { %1938 = sst [smem:[#allocation18_spill]] %s1928_s0 }
   0x2   :  { %1939 = sst [smem:[#allocation19_spill]] %s1929_s1 }
   0x3   :  { %9 = vsyncpa [#allocation3], 0 }
   0x4   :  { %11 = vsyncpa [#allocation3 + $0x1], 0 }
   0x5   :  { %12 = vsyncpa [#allocation6], 0 }
   0x6   :  { %14 = vsyncpa [#allocation6 + $0x1], 0 }
   0x7   :  { %15 = vsyncpa [#allocation9], 0 }
   0x8   :  { %17 = vsyncpa [#allocation9 + $0x1], 0 }
   0x9   :  { %18 = vsyncpa [#allocation4], 0 }
   0xa   :  { %20 = vsyncpa [#allocation4 + $0x1], 0  ;;  %s1394_s15 = smov 0   ;;  %s1396_s16 = smov 0  }
   0xb   :  { %s1398_s17 = smov 0   ;;  %s1400_s18 = smov 0  }
   0xc LB: > { %1940 = sst [smem:[#allocation15_spill]] %s1336_s17  ;;  %s1415_s19 = sadd.s32 4294967295, %s1340_s18   ;;  %s1340_s18 = sphi %s1400_s18, %s1963_s18   ;;  %s1336_s17 = sphi %s1398_s17, %s1965_s17   ;;  %s1332_s16 = sphi %s1396_s16, %s1967_s16   ;;  %s1328_s15 = sphi %s1394_s15, %s1966_s15  }
   0xd   : > { %s957_s20 = sadd.s32 4294967294, %s1340_s18   ;;  %s1419_s21 = sadd.s32 1, %s1340_s18  }
   0xe   : > { %1941 = sst [smem:[#allocation16_spill]] %s1419_s21  ;;  %s33_s22 = sadd.s32 1, %s1336_s17 }
   0xf   : > { %s30_s23 = ssub.s32 %s1340_s18, %s1419_s21  ;;  %p40_p0 = scmp.ne.s32.totalorder %s1336_s17, %s1332_s16 }
  0x10   : > { %p31_p1 = scmp.eq.s32.totalorder %s30_s23, 0  ;;  %p41_p2 = scmp.eq.s32.totalorder %s1340_s18, 0 }
  0x11   : > { %p46_p3 = scmp.ne.s32.totalorder %s1332_s16, %s1328_s15  ;;  %p47_p4 = scmp.eq.s32.totalorder %s1415_s19, 0 }
  0x12   : > { %s1431_s24 = scalar_select %p31_p1, %s1336_s17, %s33_s22  }
  0x13   : > { %p42_p5 = por %p41_p2, %p40_p0  ;;  %p1433_p6 = por %p47_p4, %p46_p3 }
  0x14   : > { %1942 = sst [smem:[#allocation17_spill]] %s1431_s24  ;;  %p148_p7 = scmp.eq.s32.totalorder %s1415_s19, 1 }
  0x15   : > { %p154_p8 = scmp.eq.s32.totalorder %s957_s20, 1  ;;  %p1025_p10 = scmp.lt.s32.totalorder %s1340_s18, 2 }
  0x16   : > { %p1440_p11 = por %p148_p7, %p40_p0  ;;  %s1449_s28 = sand.u32 1, %s1336_s17  }
  0x17   : > { %p1444_p12 = por %p154_p8, %p46_p3  ;;  %p1451_p13 = pnand %p1025_p10, %p42_p5 }
  0x18   : > { %s194_s30 = sand.u32 1, %s1340_s18   ;;  %s1933_s5 = smul.u32 12, %s1449_s28 }
  0x19   : > { %s1934_s6 = smul.u32 12, %s1340_s18  ;;  %p963_p0 = scmp.ge.s32.totalorder %s1340_s18, 1 }
  0x1a   : > { %s198_s7 = scalar_lea.vmem [#allocation5], %s1933_s5  ;;  %s1947_s1 = sld [smem:[#allocation19_spill]] }
  0x1b   : > { %s207_s8 = sshll.u32 %s198_s7, 4  ;;  %p251_p1 = scmp.lt.s32.totalorder %s1340_s18, 3  ;;  %s208_s8 = int_to_ptr.vmem [resolvable:$true] %s207_s8 }
  0x1c   : > { %s1467_s13 = scalar_lea.sflag [#allocation6], %s194_s30  ;;  %p1126_p3 = pneg %p1451_p13 }
  0x20   : > { %s203_s11 = scalar_lea.hbm %s1947_s1, %s1934_s6  ;;  %s1129_s7 = scalar_lea.hbm %s1947_s1, 24 }
  0x21   : > { %s205_s12 = sshll.u32 %s203_s11, 4  ;;  %s206_s12 = int_to_ptr.hbm [resolvable:$true] %s205_s12 }
  0x22   : > { %s1122_s14 = sshra.s32 %s206_s12, 4  ;;  %s1123_s14 = int_to_ptr.hbm [resolvable:$true] %s1122_s14 }
  0x23   : > { %s1124_s20 = scalar_lea.hbm %s1123_s14, 12  ;;  %p1130_p7 = scmp.lt.s32.totalorder %s1123_s14, %s1947_s1 }
  0x24   : > { %p1125_p2 = scmp.ne.s32.totalorder %s1123_s14, %s1124_s20  ;;  %p1131_p8 = scmp.lt.s32.totalorder %s1129_s7, %s1124_s20 }
  0x26   : > { %p1127_p4 = pnand %p1126_p3, %p1125_p2  ;;  %p1132_p10 = por %p1131_p8, %p1130_p7 }
  0x28   : > { %p1128_p5 = pneg %p1127_p4 }
  0x2a   : > { %p1133_p9 = pnand %p1132_p10, %p1128_p5 }
  0x2c   : > { %1136 = shalt.err (!%p1133_p9)
}
  0x2d   : > { %1014 = dma.hbm_to_vmem [thread:$0]  (!%p1451_p13), %s206_s12, 192, %s208_s8, %s1467_s13  }
  0x2e   : > { %p1487_p2 = pnand %p963_p0, %p251_p1  ;;  %s975_s11 = smul.u32 24, %s1449_s28 }
  0x2f   : > { %s976_s14 = smul.u32 24, %s1340_s18  ;;  %s1949_s0 = sld [smem:[#allocation18_spill]] }
  0x30   : > { %s979_s20 = smul.u32 3, %s1449_s28  ;;  %s178_s9 = scalar_lea.vmem [#allocation2], %s975_s11 }
  0x31   : > { %s187_s10 = sshll.u32 %s178_s9, 4  ;;  %s175_s8 = scalar_lea.sflag [#allocation3], %s1449_s28  ;;  %s188_s10 = int_to_ptr.vmem [resolvable:$true] %s187_s10 }
  0x35   : > { %s183_s7 = scalar_lea.hbm %s1949_s0, %s976_s14  ;;  %s1159_s17 = scalar_lea.hbm %s1949_s0, 48 }
  0x36   : > { %s185_s5 = sshll.u32 %s183_s7, 4  ;;  %s186_s5 = int_to_ptr.hbm [resolvable:$true] %s185_s5 }
  0x37   : > { %s1152_s12 = sshra.s32 %s186_s5, 4  ;;  %s1153_s12 = int_to_ptr.hbm [resolvable:$true] %s1152_s12 }
  0x38   : > { %s1154_s6 = scalar_lea.hbm %s1153_s12, 24  ;;  %p1160_p4 = scmp.lt.s32.totalorder %s1153_s12, %s1949_s0 }
  0x39   : > { %p1155_p9 = scmp.ne.s32.totalorder %s1153_s12, %s1154_s6  ;;  %p1161_p5 = scmp.lt.s32.totalorder %s1159_s17, %s1154_s6 }
  0x3b   : > { %p1157_p0 = pnand %p1155_p9, %p1126_p3  ;;  %p1162_p7 = por %p1161_p5, %p1160_p4 }
  0x3d   : > { %p1158_p1 = pneg %p1157_p0 }
  0x3f   : > { %p1163_p8 = pnand %p1162_p7, %p1158_p1 }
  0x41   : > { %1166 = shalt.err (!%p1163_p8)
}
  0x42   : > { %1011 = dma.hbm_to_vmem [thread:$0]  (!%p1451_p13), %s186_s5, 384, %s188_s10, %s175_s8  }
  0x43   : > { %s980_s11 = smul.u32 3, %s1340_s18  ;;  %s218_s23 = scalar_lea.vmem [#allocation7], %s979_s20 }
  0x44   : > { %s226_s7 = sshll.u32 %s218_s23, 4  ;;  %s1950_s22 = smul.u32 12, %s1340_s18  ;;  %s227_s7 = int_to_ptr.vmem [resolvable:$true] %s226_s7 }
  0x45   : > { %s222_s9 = scalar_lea.hbm %s1930_s2, %s980_s11  ;;  %s1189_s8 = scalar_lea.hbm %s1930_s2, 6 }
  0x46   : > { %s242_s6 = scalar_lea.hbm %s1931_s3, %s1950_s22  ;;  %s224_s14 = sshll.u32 %s222_s9, 4  ;;  %s225_s14 = int_to_ptr.hbm [resolvable:$true] %s224_s14 }
  0x47   : > { %s244_s0 = sshll.u32 %s242_s6, 4  ;;  %s1182_s21 = sshra.s32 %s225_s14, 4  ;;  %s1518_s0 = int_to_ptr.hbm [resolvable:$true] %s244_s0  ;;  %s1183_s21 = int_to_ptr.hbm [resolvable:$true] %s1182_s21 }
  0x48   : > { %s1184_s5 = scalar_lea.hbm %s1183_s21, 3  ;;  %p1190_p1 = scmp.lt.s32.totalorder %s1183_s21, %s1930_s2 }
  0x49   : > { %p1185_p10 = scmp.ne.s32.totalorder %s1183_s21, %s1184_s5  ;;  %p1191_p4 = scmp.lt.s32.totalorder %s1189_s8, %s1184_s5 }
  0x4b   : > { %p1187_p9 = pnand %p1185_p10, %p1126_p3  ;;  %p1192_p5 = por %p1191_p4, %p1190_p1 }
  0x4d   : > { %p1188_p0 = pneg %p1187_p9 }
  0x4f   : > { %p1193_p7 = pnand %p1192_p5, %p1188_p0 }
  0x51   : > { %1196 = shalt.err (!%p1193_p7)
}
  0x52   : > { %1017 = dma.hbm_to_vmem [thread:$0]  (!%p1451_p13), %s225_s14, 48, %s227_s7, %s1467_s13  }
  0x53   : > { %s1951_s1 = smul.u32 12, %s1449_s28  ;;  %s234_s22 = scalar_lea.sflag [#allocation9], %s1449_s28 }
  0x54   : > { %s1212_s12 = sshra.s32 %s1518_s0, 4  ;;  %s1219_s5 = scalar_lea.hbm %s1931_s3, 24  ;;  %s1213_s12 = int_to_ptr.hbm [resolvable:$true] %s1212_s12 }
  0x55   : > { %s237_s24 = scalar_lea.vmem [#allocation8], %s1951_s1  ;;  %s1214_s21 = scalar_lea.hbm %s1213_s12, 12 }
  0x56   : > { %s246_s9 = sshll.u32 %s237_s24, 4  ;;  %p1215_p8 = scmp.ne.s32.totalorder %s1213_s12, %s1214_s21  ;;  %s247_s9 = int_to_ptr.vmem [resolvable:$true] %s246_s9 }
  0x57   : > { %p1220_p0 = scmp.lt.s32.totalorder %s1213_s12, %s1931_s3  ;;  %p1221_p1 = scmp.lt.s32.totalorder %s1219_s5, %s1214_s21 }
  0x58   : > { %p1217_p10 = pnand %p1215_p8, %p1126_p3 }
  0x59   : > { %p1222_p4 = por %p1221_p1, %p1220_p0 }
  0x5a   : > { %p1218_p9 = pneg %p1217_p10 }
  0x5c   : > { %p1223_p5 = pnand %p1222_p4, %p1218_p9 }
  0x5e   : > { %1226 = shalt.err (!%p1223_p5)
}
  0x5f   : > { %1020 = dma.hbm_to_vmem [thread:$0]  (!%p1451_p13), %s1518_s0, 192, %s247_s9, %s234_s22  }
  0x60   : > { %255 = sbr.rel (%p1487_p2) target bundleno = 1170 (0x492), region = 36  ;;  %s1551_s28 = sand.u32 (!%p1487_p2), 1, %s1332_s16  }
  0x61   : > { %s983_s13 = smul.u32 (!%p1487_p2), 24, %s1551_s28  ;;  %s258_s7 = scalar_lea.sflag (!%p1487_p2), [#allocation3], %s1551_s28 }
  0x63   : > { %s261_s14 = scalar_lea.vmem (!%p1487_p2), [#allocation2], %s983_s13 }
  0x65   : > { %1311 = dma.done.wait (%p1433_p6), %s258_s7, 384  }
  0x66   : > { %1313 = vsyncadd (%p1433_p6), %s258_s7, 4294966912  ;;  %s267_s0 = sand.u32 1, %s1415_s19   ;;  %s984_s29 = smul.u32 12, %s1551_s28 }
  0x67   : > { %s268_s30 = scalar_lea.sflag [#allocation6], %s267_s0 }
  0x68   : > { %s1561_s8 = scalar_lea.vmem [#allocation5], %s984_s29 }
  0x69   : > { %1315 = dma.done.wait (%p1433_p6), %s268_s30, 240  }
  0x6a   : > { %1317 = vsyncadd (%p1433_p6), %s268_s30, 4294967056  ;;  %s985_s11 = smul.u32 3, %s1551_s28  ;;  %s288_s1 = scalar_lea.sflag [#allocation9], %s1551_s28 }
  0x6b   : > { %s1569_s24 = scalar_lea.vmem [#allocation8], %s984_s29 }
  0x6c   : > { %s281_s23 = scalar_lea.vmem [#allocation7], %s985_s11 }
  0x6d   : > { %1319 = dma.done.wait (%p1433_p6), %s288_s1, 192  }
  0x6e   : > { %1321 = vsyncadd (%p1433_p6), %s288_s1, 4294967104  ;;  %vm348_vm0 = vcmask 359424   ;;  %v1575_v0 = vld [vmem:[%s281_s23] sm:$0x7]  ;;  %v1577_v1 = vld [vmem:[%s261_s14] sm:$0xff]  ;;  %v1366_v6 = vmov 0   ;;  %v396_v34 = vlaneseq }
  0x6f   : > { %v1579_v2 = vld [vmem:[%s261_s14 + $0x8] sm:$0xff]  ;;  %vm429_vm1 = vcmp.gt.s32.totalorder %v1575_v0, 0  ;;  %v1582_v3 = vld [vmem:[%s261_s14 + $0x10] sm:$0xff]  ;;  %v336_v4 = vrot.slane %v1577_v1, 4  ;;  %vm434_vm2 = vcmask 1040384   ;;  %vm437_vm3 = vcmask 352256  }
  0x70   : > { %v342_v5 = vrot.slane %v1579_v2, 4  ;;  %v430_v7 = vsel %vm429_vm1, 1, %v1366_v6  ;;  %v349_v8 = vsel %vm348_vm0, %v1582_v3, -inf  ;;  %s964_s25 = sshll.u32 %s1551_s28, 3  ;;  %v1610_v42 = vshrl.u32 %v396_v34, 7  ;;  %s1675_s6 = smov 2147483648  }
  0x71   : > { %v431_v9 = vperm.slane %v430_v7, 0  ;;  %v432_v10 = vperm.slane %v430_v7, 1  ;;  %v433_v11 = vperm.slane %v430_v7, 2  ;;  %v337_v12 = vmax.f32 %v1577_v1, %v336_v4  ;;  %s1671_s21 = scalar_lea.vmem [#allocation10], %s964_s25  ;;  %s1673_s17 = smov 2147483647  }
  0x72   : > { %v343_v13 = vmax.f32 %v1579_v2, %v342_v5  ;;  %v350_v14 = vrot.slane %v349_v8, 4  ;;  %v398_v45 = vperm.slane %v1575_v0, 0  ;;  %v399_v46 = vperm.slane %v1575_v0, 1  ;;  %s1677_s5 = smov 0  }
  0x73   : > { %v435_v15 = vsel %vm434_vm2, %v431_v9, 0  ;;  %v436_v16 = vsel %vm434_vm2, %v432_v10, 0  ;;  %v438_v17 = vsel %vm437_vm3, %v433_v11, 0  ;;  %v338_v18 = vrot.slane %v337_v12, 2 }
  0x74   : > { %v439_v19 = vadd.s32 %v436_v16, %v435_v15  ;;  %v344_v20 = vrot.slane %v343_v13, 2  ;;  %v351_v21 = vmax.f32 %v349_v8, %v350_v14  ;;  %v400_v47 = vperm.slane %v1575_v0, 2 }
  0x75   : > { %v339_v22 = vmax.f32 %v337_v12, %v338_v18  ;;  %vm401_vm4 = vcmp.eq.s32.totalorder %v398_v45, %v1610_v42  ;;  %vm402_vm5 = vcmp.eq.s32.totalorder %v399_v46, %v1610_v42  ;;  %vm467_vm7 = vcmask 1041408  }
  0x76   : > { %v440_v23 = vadd.s32 %v439_v19, %v438_v17  ;;  %v345_v24 = vmax.f32 %v343_v13, %v344_v20  ;;  %v352_v25 = vrot.slane %v351_v21, 2  ;;  %vm403_vm6 = vcmp.eq.s32.totalorder %v400_v47, %v1610_v42 }
  0x77   : > { %v340_v26 = vrot.slane %v339_v22, 1  ;;  %v404_v48 = vsel %vm401_vm4, %v1577_v1, 0.0  ;;  %v405_v49 = vsel %vm402_vm5, %v1579_v2, 0.0  ;;  %v406_v50 = vsel %vm403_vm6, %v1582_v3, 0.0 }
  0x78   : > { %v442_v27 = vshrl.u32 %v440_v23, 16  ;;  %v346_v28 = vrot.slane %v345_v24, 1  ;;  %v353_v29 = vmax.f32 %v351_v21, %v352_v25  ;;  %v441_v38 = vand.u32 65535, %v440_v23 }
  0x79   : > { %v1596_v30 = vmax.f32 %v339_v22, %v340_v26  ;;  %v407_v52 = vrot.slane %v404_v48, 4  ;;  %v413_v55 = vrot.slane %v405_v49, 4  ;;  %v419_v56 = vsel %vm348_vm0, %v406_v50, 0.0 }
  0x7a   : > { %v444_v31 = vcvt.s32.f32 %v442_v27  ;;  %v1598_v32 = vmax.f32 %v345_v24, %v346_v28  ;;  %v354_v33 = vrot.slane %v353_v29, 1  ;;  %v443_v44 = vcvt.s32.f32 %v441_v38 }
  0x7b   : > { %v356_v35 = vsub.f32 %v1577_v1, %v1596_v30  ;;  %v408_v62 = vadd.f32 %v407_v52, %v404_v48  ;;  %v420_v63 = vrot.slane %v419_v56, 4  ;;  %v414_v7 = vadd.f32 %v413_v55, %v405_v49 }
  0x7c   : > { %447 = vadd.xlane.f32.xlu0 %v444_v31  ;;  %v1602_v36 = vmax.f32 %v353_v29, %v354_v33  ;;  %v357_v37 = vsub.f32 %v1579_v2, %v1598_v32 }
  0x7d   : > { %v359_v39 = vmul.f32 1.442695, %v356_v35  ;;  %v409_v12 = vrot.slane %v408_v62, 2  ;;  %v421_v13 = vadd.f32 %v420_v63, %v419_v56  ;;  %v415_v16 = vrot.slane %v414_v7, 2 }
  0x7e   : > { %v358_v40 = vsub.f32 %v1582_v3, %v1602_v36  ;;  %v361_v41 = vmul.f32 1.442695, %v357_v37 }
  0x7f   : > { %1110 = vpow2.f32 %v359_v39  ;;  %v410_v21 = vadd.f32 %v409_v12, %v408_v62  ;;  %v422_v22 = vrot.slane %v421_v13, 2  ;;  %v416_v24 = vadd.f32 %v415_v16, %v414_v7 }
  0x80   : > { %1112 = vpow2.f32 %v361_v41  ;;  %v363_v43 = vmul.f32 1.442695, %v358_v40 }
  0x81   : > { %v411_v26 = vrot.slane %v410_v21, 1  ;;  %v423_v27 = vadd.f32 %v422_v22, %v421_v13  ;;  %v417_v28 = vrot.slane %v416_v24, 1 }
  0x82   : > { %1114 = vpow2.f32 %v363_v43 }
  0x83   : > { %v1623_v35 = vadd.f32 %v411_v26, %v410_v21  ;;  %v424_v37 = vrot.slane %v423_v27, 1  ;;  %v1625_v39 = vadd.f32 %v417_v28, %v416_v24 }
  0x84   : > { %445 = vadd.xlane.f32.xlu0 %v443_v44 }
  0x85   : > { %v1111_v51 = vpop.eup %1110  ;;  %v1633_v45 = vadd.f32 %v424_v37, %v423_v27 }
  0x86   : > { %v1113_v53 = vpop.eup %1112  ;;  %v365_v54 = vrot.slane %v1111_v51, 4 }
  0x87   : > { %v371_v57 = vrot.slane %v1113_v53, 4 }
  0x88   : > { %v1115_v58 = vpop.eup %1114  ;;  %v366_v59 = vadd.f32 %v1111_v51, %v365_v54 }
  0x89   : > { %v372_v60 = vadd.f32 %v1113_v53, %v371_v57  ;;  %v377_v61 = vsel %vm348_vm0, %v1115_v58, 0.0 }
  0x8a   : > { %v367_v4 = vrot.slane %v366_v59, 2  ;;  %v378_v5 = vrot.slane %v377_v61, 4 }
  0x8b   : > { %v373_v8 = vrot.slane %v372_v60, 2 }
  0x8c   : > { %v368_v9 = vadd.f32 %v367_v4, %v366_v59  ;;  %v379_v10 = vadd.f32 %v378_v5, %v377_v61 }
  0x8d   : > { %v374_v11 = vadd.f32 %v373_v8, %v372_v60 }
  0x8e   : > { %v369_v14 = vrot.slane %v368_v9, 1  ;;  %v380_v15 = vrot.slane %v379_v10, 2 }
  0x8f   : > { %v375_v17 = vrot.slane %v374_v11, 1 }
  0x90   : > { %v370_v18 = vadd.f32 %v369_v14, %v368_v9  ;;  %v381_v19 = vadd.f32 %v380_v15, %v379_v10 }
  0x91   : > { %v376_v20 = vadd.f32 %v375_v17, %v374_v11 }
  0x92   : > { %v382_v23 = vrot.slane %v381_v19, 1  ;;  %1116 = vlog2.f32 %v370_v18 }
  0x93   : > { %1118 = vlog2.f32 %v376_v20 }
  0x94   : > { %v383_v25 = vadd.f32 %v382_v23, %v381_v19 }
  0x96   : > { %1120 = vlog2.f32 %v383_v25 }
  0x98   : > { %v1117_v29 = vpop.eup %1116 }
  0x99   : > { %v1119_v31 = vpop.eup %1118  ;;  %v385_v33 = vmul.f32 0.6931472, %v1117_v29 }
  0x9a   : > { %v387_v38 = vmul.f32 0.6931472, %v1119_v31 }
  0x9b   : > { %v1628_v40 = vadd.f32 %v385_v33, %v1596_v30 }
  0x9c   : > { %v1121_v41 = vpop.eup %1120  ;;  %v1631_v43 = vadd.f32 %v387_v38, %v1598_v32 }
  0x9d   : > { %v389_v44 = vmul.f32 0.6931472, %v1121_v41  ;;  %v426_v46 = vsub.f32 %v1628_v40, %v1623_v35  ;;  %v393_v47 = vsub.f32 %v1628_v40, %v1577_v1 }
  0x9e   : > { %v394_v48 = vsub.f32 %v1631_v43, %v1579_v2  ;;  %v427_v30 = vsub.f32 %v1631_v43, %v1625_v39 }
  0x9f   : > { %v1644_v49 = vadd.f32 %v389_v44, %v1602_v36 }
  0xa0   : > { %v464_v32 = vrot.slane %v394_v48, 7 }
  0xa1   : > { %v395_v50 = vsub.f32 %v1644_v49, %v1582_v3  ;;  %v428_v51 = vsub.f32 %v1644_v49, %v1633_v45 }
  0xa2   : > { %v466_v52 = vsel %vm434_vm2, %v393_v47, %v464_v32 }
  0xa3   : > { %v465_v1 = vrot.slane %v395_v50, 6 }
  0xa5   : > { %v468_v53 = vsel %vm467_vm7, %v466_v52, %v465_v1 }
  0xa6   : > { %v470_v2 = vsel %vm429_vm1, -1e+30, %v468_v53 }
  0xa7   : > { %v472_v54 = vperm.slane %v470_v2, 0  ;;  %v473_v55 = vperm.slane %v470_v2, 1  ;;  %v474_v36 = vperm.slane %v470_v2, 2 }
  0xa9   : > { %vm475_vm8 = vcmp.lt.s32.totalorder %v472_v54, 0  ;;  %vm476_vm9 = vcmp.lt.s32.totalorder %v473_v55, 0  ;;  %vm477_vm10 = vcmp.lt.s32.totalorder %v474_v36, 0  ;;  %v478_v56 = vxor.u32 2147483647, %v472_v54 }
  0xaa   : > { %v479_v3 = vxor.u32 2147483647, %v473_v55  ;;  %v480_v57 = vxor.u32 2147483647, %v474_v36 }
  0xab   : > { %v1654_v58 = vsel %vm475_vm8, %v478_v56, %v472_v54 }
  0xac   : > { %v1656_v59 = vsel %vm476_vm9, %v479_v3, %v473_v55  ;;  %v1658_v60 = vsel %vm477_vm10, %v480_v57, %v474_v36 }
  0xef   : > { %v448_v61 = vpop.xlane.xlu0 %447 }
  0xf0   : > { %v450_v62 = vcvt.f32.s32 %v448_v61 }
  0xf2   : > { %v451_v4 = vshll.u32 %v450_v62, 16 }
  0xf7   : > { %v446_v63 = vpop.xlane.xlu0 %445 }
  0xf8   : > { %v449_v5 = vcvt.f32.s32 %v446_v63 }
  0xfa   : > { %v452_v7 = vadd.s32 %v451_v4, %v449_v5 }
  0xfc   : > { %v453_v8 = vrot.slane %v452_v7, 4 }
  0xfe   : > { %v454_v9 = vadd.s32 %v453_v8, %v452_v7 }
 0x100   : > { %v455_v10 = vrot.slane %v454_v9, 2 }
 0x102   : > { %v456_v11 = vadd.s32 %v455_v10, %v454_v9 }
 0x104   : > { %v457_v12 = vrot.slane %v456_v11, 1 }
 0x106   : > { %v458_v13 = vadd.s32 %v457_v12, %v456_v11 }
 0x108   : > { %986 = vpush %v458_v13 }
 0x139   : > { %s1660_s9 = spop %986 }
 0x13a   : > { %s1663_s22 = smul.u32 3, %s1660_s9 }
 0x13c   : > { %p484_p6 = scmp.gt.s32.totalorder %s1663_s22, 1 }
 0x13e   : > { %s1667_s12 = scalar_select %p484_p6, %s1663_s22, 1 }
 0x13f LB: >> { %s494_s20 = sshra.s32 %s1348_s6, 1  ;;  %s495_s10 = sshra.s32 %s1344_s17, 1  ;;  %v1367_v15 = vmov 0   ;;  %s1352_s5 = sphi %s1677_s5, %s491_s5   ;;  %s1348_s6 = sphi %s1675_s6, %s1952_s6   ;;  %s1344_s17 = sphi %s1673_s17, %s1969_s17  }
 0x140   : >> { %s496_s13 = sadd.s32 %s495_s10, %s494_s20  ;;  %s497_s7 = sand.u32 %s1344_s17, %s1348_s6 }
 0x141   : >> { %s498_s14 = sand.u32 1, %s497_s7  ;;  %p531_p13 = scmp.lt.s32.totalorder %s1348_s6, %s1344_s17 }
 0x142   : >> { %s1692_s0 = sadd.s32 %s498_s14, %s496_s13  ;;  %s491_s5 = sadd.s32 1, %s1352_s5  }
 0x143   : >> { %v500_v14 = vstv %s1692_s0  ;;  %s539_s30 = sadd.s32 1, %s1692_s0  ;;  %p488_p10 = scmp.ge.s32.totalorder %s491_s5, 32  }
 0x144   : >> { %vm501_vm11 = vcmp.gt.s32.totalorder %v1654_v58, %v500_v14  ;;  %vm502_vm12 = vcmp.gt.s32.totalorder %v1656_v59, %v500_v14  ;;  %vm503_vm13 = vcmp.gt.s32.totalorder %v1658_v60, %v500_v14  ;;  %s1757_s25 = smov (%p488_p10), 299  }
 0x145   : >> { %v504_v16 = vsel %vm501_vm11, 1, %v1367_v15  ;;  %v505_v17 = vsel %vm502_vm12, 1, %v1367_v15  ;;  %v506_v18 = vsel %vm503_vm13, 1, %v1367_v15 }
 0x146   : >> { %v507_v19 = vsel %vm434_vm2, %v504_v16, 0  ;;  %v508_v20 = vsel %vm434_vm2, %v505_v17, 0  ;;  %v509_v21 = vsel %vm437_vm3, %v506_v18, 0  ;;  %v1746_v17 = vand.u32 (%p488_p10), 127, %v396_v34 }
 0x147   : >> { %v510_v22 = vadd.s32 %v508_v20, %v507_v19 }
 0x148   : > { %v1749_v18 = vadd.s32 (%p488_p10), 128, %v1746_v17  ;;  %v1752_v19 = vadd.s32 (%p488_p10), 256, %v1746_v17 }
 0x149   : >> { %v511_v23 = vadd.s32 %v510_v22, %v509_v21 }
 0x14b   : >> { %v513_v24 = vshrl.u32 %v511_v23, 16  ;;  %v512_v26 = vand.u32 65535, %v511_v23 }
 0x14d   : >> { %v515_v25 = vcvt.s32.f32 %v513_v24  ;;  %v514_v27 = vcvt.s32.f32 %v512_v26 }
 0x14f   : >> { %518 = vadd.xlane.f32.xlu0 %v515_v25 }
 0x157   : >> { %516 = vadd.xlane.f32.xlu0 %v514_v27 }
 0x1c2   : >> { %v519_v28 = vpop.xlane.xlu0 %518 }
 0x1c3   : >> { %v521_v29 = vcvt.f32.s32 %v519_v28 }
 0x1c5   : >> { %v522_v33 = vshll.u32 %v521_v29, 16 }
 0x1ca   : >> { %v517_v31 = vpop.xlane.xlu0 %516 }
 0x1cb   : >> { %v520_v37 = vcvt.f32.s32 %v517_v31 }
 0x1cd   : >> { %v523_v38 = vadd.s32 %v522_v33, %v520_v37 }
 0x1cf   : >> { %v524_v41 = vrot.slane %v523_v38, 4 }
 0x1d1   : >> { %v525_v44 = vadd.s32 %v524_v41, %v523_v38 }
 0x1d3   : >> { %v526_v47 = vrot.slane %v525_v44, 2 }
 0x1d5   : >> { %v527_v48 = vadd.s32 %v526_v47, %v525_v44 }
 0x1d7   : >> { %v528_v32 = vrot.slane %v527_v48, 1 }
 0x1d9   : >> { %v529_v50 = vadd.s32 %v528_v32, %v527_v48 }
 0x1db   : >> { %988 = vpush %v529_v50 }
 0x20c   : >> { %s989_s29 = spop %988 }
 0x20d   : >> { %p532_p3 = scmp.lt.s32.totalorder %s989_s29, %s1667_s12  ;;  %p536_p2 = scmp.ge.s32.totalorder %s989_s29, %s1667_s12 }
 0x20e   : > { %s1759_s12 = smov (%p488_p10), 0  }
 0x20f   : >> { %p533_p7 = pnand %p532_p3, %p531_p13  ;;  %p537_p8 = pnand %p536_p2, %p531_p13 }
 0x210   : > { %490 = sbr.rel (!%p488_p10) target bundleno = 319 (0x13f), region = 133 }
 0x211   : >> { %s1969_s17 = smov (!%p533_p7, %s1344_s17), %s1692_s0 }
 0x212   : >> { %s966_s11 = scalar_select %p537_p8, %s1348_s6, %s539_s30  }
 0x213   : > { %s1761_s17 = smov (%p488_p10), 0  }
 0x214   : >> { %s1952_s6 = smov %s966_s11  ;;  %v1716_v52 = vstv (%p488_p10), %s966_s11 }
 0x215   : > { %vm542_vm14 = vcmp.gt.s32.totalorder %v1654_v58, %v1716_v52  ;;  %vm543_vm15 = vcmp.gt.s32.totalorder %v1656_v59, %v1716_v52  ;;  %vm544_vm0 = vcmp.gt.s32.totalorder %v1658_v60, %v1716_v52  ;;  %vm573_vm4 = vcmp.eq.s32.totalorder %v1654_v58, %v1716_v52 }
 0x216   : > { %v545_v1 = vsel %vm542_vm14, 1, %v1366_v6  ;;  %v546_v53 = vsel %vm543_vm15, 1, %v1366_v6  ;;  %v547_v2 = vsel %vm544_vm0, 1, %v1366_v6  ;;  %vm574_vm5 = vcmp.eq.s32.totalorder %v1656_v59, %v1716_v52 }
 0x217   : > { %v548_v54 = vsel %vm434_vm2, %v545_v1, 0  ;;  %v549_v55 = vsel %vm434_vm2, %v546_v53, 0  ;;  %v550_v36 = vsel %vm437_vm3, %v547_v2, 0  ;;  %vm575_vm6 = vcmp.eq.s32.totalorder %v1658_v60, %v1716_v52 }
 0x218   : > { %v551_v56 = vadd.s32 %v549_v55, %v548_v54 }
 0x21a   : > { %v552_v3 = vadd.s32 %v551_v56, %v550_v36 }
 0x21c   : > { %v554_v57 = vshrl.u32 %v552_v3, 16  ;;  %v553_v62 = vand.u32 65535, %v552_v3 }
 0x21e   : > { %v556_v61 = vcvt.s32.f32 %v554_v57  ;;  %v555_v63 = vcvt.s32.f32 %v553_v62 }
 0x220   : > { %559 = vadd.xlane.f32.xlu0 %v556_v61 }
 0x228   : > { %557 = vadd.xlane.f32.xlu0 %v555_v63 }
 0x293   : > { %v560_v4 = vpop.xlane.xlu0 %559 }
 0x294   : > { %v562_v5 = vcvt.f32.s32 %v560_v4 }
 0x296   : > { %v563_v8 = vshll.u32 %v562_v5, 16 }
 0x29b   : > { %v558_v7 = vpop.xlane.xlu0 %557 }
 0x29c   : > { %v561_v9 = vcvt.f32.s32 %v558_v7 }
 0x29e   : > { %v564_v10 = vadd.s32 %v563_v8, %v561_v9 }
 0x2a0   : > { %v565_v11 = vrot.slane %v564_v10, 4 }
 0x2a2   : > { %v566_v12 = vadd.s32 %v565_v11, %v564_v10 }
 0x2a4   : > { %v567_v13 = vrot.slane %v566_v12, 2 }
 0x2a6   : > { %v568_v14 = vadd.s32 %v567_v13, %v566_v12 }
 0x2a8   : > { %v569_v15 = vrot.slane %v568_v14, 1 }
 0x2aa   : > { %v570_v16 = vadd.s32 %v569_v15, %v568_v14 }
 0x2ac   : > { %990 = vpush %v570_v16 }
 0x2dd   : > { %s991_s23 = spop %990 }
 0x2de   : > { %s1755_s1 = ssub.s32 %s1663_s22, %s991_s23 }
 0x2df LB: >> { %s588_s22 = sadd.s32 %s1356_s25, %s1360_s12  ;;  %v1368_v20 = vmov 0   ;;  %p624_p9 = scmp.lt.s32.totalorder %s1360_s12, %s1356_s25  ;;  %s1364_s17 = sphi %s1761_s17, %s585_s17   ;;  %s1360_s12 = sphi %s1759_s12, %s1953_s12   ;;  %s1356_s25 = sphi %s1757_s25, %s1971_s25  }
 0x2e0   : >> { %s1774_s6 = sshra.s32 %s588_s22, 1  ;;  %s585_s17 = sadd.s32 1, %s1364_s17  }
 0x2e1   : >> { %v590_v34 = vstv %s1774_s6  ;;  %s632_s20 = sadd.s32 1, %s1774_s6  ;;  %p582_p6 = scmp.ge.s32.totalorder %s585_s17, 9  }
 0x2e2   : >> { %vm591_vm8 = vcmp.le.s32.totalorder %v1746_v17, %v590_v34  ;;  %vm592_vm9 = vcmp.le.s32.totalorder %v1749_v18, %v590_v34  ;;  %vm593_vm10 = vcmp.le.s32.totalorder %v1752_v19, %v590_v34  ;;  %p641_p13 = scmp.gt.s32.totalorder (%p582_p6), %s1755_s1, 0  ;;  %v690_v56 = vld [vmem:[%s1561_s8] sm:$0xff] (%p582_p6)  ;;  %v691_v3 = vld [vmem:[%s1561_s8 + $0x8] sm:$0xf] (%p582_p6)  ;;  %v663_v16 = vrot.slane (%p582_p6), %v427_v30, 7  ;;  %s775_s8 = scvt.s32.f32 (%p582_p6), %s1660_s9 }
 0x2e3   : >> { %vm594_vm11 = vmand %vm573_vm4, %vm591_vm8  ;;  %v692_v57 = vld [vmem:[%s1569_s24] sm:$0xff] (%p582_p6)  ;;  %v693_v61 = vld [vmem:[%s1569_s24 + $0x8] sm:$0xf] (%p582_p6)  ;;  %v664_v43 = vrot.slane (%p582_p6), %v428_v51, 6  ;;  %s972_s24 = sshll.u32 (%p582_p6), %s1415_s19, 3  ;;  %s796_s30 = sshll.u32 (%p582_p6), %s1671_s21, 4  ;;  %s797_s30 = int_to_ptr.vmem [resolvable:$true] %s796_s30 }
 0x2e4   : >> { %vm595_vm12 = vmand %vm574_vm5, %vm592_vm9  ;;  %v597_v21 = vsel %vm594_vm11, 1, %v1368_v20  ;;  %v694_v62 = vsub.f32 (%p582_p6), %v690_v56, %v692_v57  ;;  %v695_v63 = vsub.f32 (%p582_p6), %v691_v3, %v693_v61  ;;  %v665_v59 = vsel (%p582_p6), %vm434_vm2, %v426_v46, %v663_v16  ;;  %s794_s29 = scalar_lea.hbm (%p582_p6), %s1932_s4, %s972_s24  ;;  %s784_s9 = scalar_lea.sflag (%p582_p6), [#allocation4], %s1551_s28 }
 0x2e5   : >> { %vm596_vm13 = vmand %vm575_vm6, %vm593_vm10  ;;  %v598_v22 = vsel %vm595_vm12, 1, %v1368_v20  ;;  %v600_v23 = vsel %vm434_vm2, %v597_v21, 0  ;;  %s798_s11 = sshll.u32 (%p582_p6), %s794_s29, 4  ;;  %s1262_s17 = scalar_lea.hbm (%p582_p6), %s1932_s4, 16  ;;  %s799_s11 = int_to_ptr.hbm [resolvable:$true] %s798_s11 }
 0x2e6   : >> { %v599_v24 = vsel %vm596_vm13, 1, %v1368_v20  ;;  %v601_v25 = vsel %vm434_vm2, %v598_v22, 0  ;;  %v696_v8 = vand.u32 (%p582_p6), 2147483647, %v694_v62  ;;  %v697_v9 = vand.u32 (%p582_p6), 2147483647, %v695_v63 }
 0x2e7   : >> { %v602_v26 = vsel %vm437_vm3, %v599_v24, 0  ;;  %v603_v27 = vadd.s32 %v601_v25, %v600_v23  ;;  %v666_v22 = vsel (%p582_p6), %vm467_vm7, %v665_v59, %v664_v43  ;;  %s1256_s23 = sshra.s32 (%p582_p6), %s799_s11, 4  ;;  %s1257_s23 = int_to_ptr.hbm [resolvable:$true] %s1256_s23 }
 0x2e8   : > { %v700_v12 = vmul.f32 (%p582_p6), 0.5, %v696_v8  ;;  %v701_v13 = vmul.f32 (%p582_p6), 0.5, %v697_v9  ;;  %v969_v14 = vadd.f32 (%p582_p6), -0.5, %v696_v8  ;;  %v970_v15 = vadd.f32 (%p582_p6), -0.5, %v697_v9  ;;  %p1263_p8 = scmp.lt.s32.totalorder (%p582_p6), %s1257_s23, %s1932_s4 }
 0x2e9   : >> { %v604_v28 = vadd.s32 %v603_v27, %v602_v26 }
 0x2eb   : >> { %v606_v29 = vshrl.u32 %v604_v28, 16  ;;  %v605_v33 = vand.u32 65535, %v604_v28 }
 0x2ed   : >> { %v608_v31 = vcvt.s32.f32 %v606_v29  ;;  %v607_v37 = vcvt.s32.f32 %v605_v33 }
 0x2ef   : >> { %611 = vadd.xlane.f32.xlu0 %v608_v31 }
 0x2f7   : >> { %609 = vadd.xlane.f32.xlu0 %v607_v37 }
 0x362   : >> { %v612_v38 = vpop.xlane.xlu0 %611 }
 0x363   : >> { %v614_v41 = vcvt.f32.s32 %v612_v38 }
 0x365   : >> { %v615_v47 = vshll.u32 %v614_v41, 16 }
 0x36a   : >> { %v610_v44 = vpop.xlane.xlu0 %609 }
 0x36b   : >> { %v613_v48 = vcvt.f32.s32 %v610_v44 }
 0x36d   : >> { %v616_v32 = vadd.s32 %v615_v47, %v613_v48 }
 0x36f   : >> { %v617_v50 = vrot.slane %v616_v32, 4 }
 0x371   : >> { %v618_v1 = vadd.s32 %v617_v50, %v616_v32 }
 0x373   : >> { %v619_v53 = vrot.slane %v618_v1, 2 }
 0x375   : >> { %v620_v2 = vadd.s32 %v619_v53, %v618_v1 }
 0x377   : >> { %v621_v54 = vrot.slane %v620_v2, 1 }
 0x379   : >> { %v622_v55 = vadd.s32 %v621_v54, %v620_v2 }
 0x37b   : >> { %992 = vpush %v622_v55 }
 0x3ac   : >> { %s993_s5 = spop %992 }
 0x3ad   : >> { %p625_p0 = scmp.ge.s32.totalorder %s993_s5, %s1755_s1  ;;  %p629_p1 = scmp.lt.s32.totalorder %s993_s5, %s1755_s1 }
 0x3ae   : > { %s1258_s1 = scalar_lea.hbm (%p582_p6), %s1257_s23, 8 }
 0x3af   : >> { %p626_p4 = pnand %p625_p0, %p624_p9  ;;  %p630_p5 = pnand %p629_p1, %p624_p9 }
 0x3b0   : > { %584 = sbr.rel (!%p582_p6) target bundleno = 735 (0x2df), region = 144  ;;  %p1259_p3 = scmp.ne.s32.totalorder (%p582_p6), %s1257_s23, %s1258_s1 }
 0x3b1   : >> { %s1971_s25 = smov (!%p626_p4, %s1356_s25), %s1774_s6  ;;  %p1264_p10 = scmp.lt.s32.totalorder (%p582_p6), %s1262_s17, %s1258_s1 }
 0x3b2   : >> { %s968_s10 = scalar_select %p630_p5, %s1360_s12, %s632_s20  }
 0x3b3   : > { %p1260_p2 = pnand (%p582_p6), %p1259_p3, %p1440_p11  ;;  %p1265_p9 = por (%p582_p6), %p1264_p10, %p1263_p8 }
 0x3b4   : >> { %s1953_s12 = smov %s968_s10  ;;  %v634_v36 = vstv (%p582_p6), %s968_s10 }
 0x3b5   : > { %vm635_vm8 = vcmp.le.s32.totalorder %v1746_v17, %v634_v36  ;;  %vm636_vm9 = vcmp.le.s32.totalorder %v1749_v18, %v634_v36  ;;  %vm637_vm10 = vcmp.le.s32.totalorder %v1752_v19, %v634_v36  ;;  %s642_s13 = scalar_select %p641_p13, 1, 0  ;;  %v702_v17 = vmul.f32 %v700_v12, %v696_v8 }
 0x3b6   : > { %vm1818_vm11 = vmand %vm573_vm4, %vm635_vm8  ;;  %v703_v18 = vmul.f32 %v701_v13, %v697_v9  ;;  %p1261_p7 = pneg %p1260_p2 }
 0x3b7   : > { %vm1825_vm12 = vmand %vm574_vm5, %vm636_vm9  ;;  %v643_v7 = vstv %s642_s13  ;;  %vm699_vm9 = vcmp.lt.f32.partialorder %v697_v9, 1.0 }
 0x3b8   : > { %vm1832_vm13 = vmand %vm575_vm6, %vm637_vm10  ;;  %vm1836_vm4 = vcmp.eq.s32.totalorder %v643_v7, 1  ;;  %vm698_vm6 = vcmp.lt.f32.partialorder %v696_v8, 1.0  ;;  %v707_v34 = vsel %vm699_vm9, %v703_v18, %v970_v15  ;;  %p1266_p0 = pnand %p1265_p9, %p1261_p7 }
 0x3b9   : > { %vm645_vm5 = vmand %vm1818_vm11, %vm1836_vm4  ;;  %v706_v19 = vsel %vm698_vm6, %v702_v17, %v969_v14  ;;  %712 = vst [vmem:[#allocation1 + $0x10] ss:$2 sm:$0xff] %v707_v34 }
 0x3ba   : > { %vm646_vm8 = vmand %vm1825_vm12, %vm1836_vm4  ;;  %710 = vst [vmem:[#allocation1] ss:$2 sm:$0xff] %v706_v19 }
 0x3bb   : > { %vm647_vm10 = vmand %vm1832_vm13, %vm1836_vm4  ;;  %vm734_vm4 = vcmask 355328  }
 0x3bc   : > { %vm648_vm11 = vmor %vm542_vm14, %vm645_vm5 }
 0x3bd   : > { %vm649_vm12 = vmor %vm543_vm15, %vm646_vm8  ;;  %v651_v20 = vsel %vm648_vm11, 1, %v1366_v6 }
 0x3be   : > { %vm650_vm13 = vmor %vm544_vm0, %vm647_vm10  ;;  %v652_v39 = vsel %vm649_vm12, 1, %v1366_v6  ;;  %vm719_vm0 = vcmask 1043456  }
 0x3bf   : > { %v653_v30 = vsel %vm650_vm13, 1, %v1366_v6  ;;  %v654_v58 = vrot.slane %v652_v39, 7 }
 0x3c0   : > { %v655_v60 = vrot.slane %v653_v30, 6  ;;  %v715_v51 = vld.sshfl [vmem:[#allocation1 + $0x10] sm:$0xff pattern:$0x75316420] }
 0x3c1   : > { %v656_v52 = vsel %vm434_vm2, %v651_v20, %v654_v58  ;;  %v713_v45 = vld.sshfl [vmem:[#allocation1] sm:$0xff pattern:$0x75316420]  ;;  %v714_v46 = vld.sshfl [vmem:[#allocation1 + $0x8] sm:$0xff pattern:$0x75316420] }
 0x3c2   : > { %v657_v21 = vsel %vm467_vm7, %v656_v52, %v655_v60  ;;  %v720_v23 = vsel %vm719_vm0, %v713_v45, 0.0  ;;  %v727_v24 = vsel %vm719_vm0, %v714_v46, 0.0  ;;  %v735_v33 = vsel %vm734_vm4, %v715_v51, 0.0 }
 0x3c3   : > { %vm658_vm14 = vcmp.ne.s32.totalorder %v657_v21, 0  ;;  %v721_v28 = vrot.slane %v720_v23, 4  ;;  %v728_v31 = vrot.slane %v727_v24, 4  ;;  %v736_v38 = vrot.slane %v735_v33, 4 }
 0x3c4   : > { %vm659_vm15 = vmor %vm429_vm1, %vm658_vm14  ;;  %v776_v52 = vstv %s775_s8 }
 0x3c5   : > { %v668_v6 = vsel %vm659_vm15, %v666_v22, 0.0  ;;  %v722_v37 = vadd.f32 %v721_v28, %v720_v23  ;;  %v729_v44 = vadd.f32 %v728_v31, %v727_v24  ;;  %v737_v48 = vadd.f32 %v736_v38, %v735_v33 }
 0x3c6   : > { %v670_v49 = vperm.slane %v668_v6, 0  ;;  %v671_v35 = vperm.slane %v668_v6, 1  ;;  %v672_v40 = vperm.slane %v668_v6, 2 }
 0x3c7   : > { %v723_v47 = vrot.slane %v722_v37, 2  ;;  %v730_v32 = vrot.slane %v729_v44, 2  ;;  %v738_v1 = vrot.slane %v737_v48, 2 }
 0x3c8   : > { %v676_v25 = vsel %vm434_vm2, %v670_v49, 0.0  ;;  %v677_v26 = vsel %vm434_vm2, %v671_v35, 0.0  ;;  %v679_v27 = vsel %vm437_vm3, %v672_v40, 0.0 }
 0x3c9   : > { %v678_v29 = vadd.f32 %v677_v26, %v676_v25  ;;  %v724_v50 = vadd.f32 %v723_v47, %v722_v37  ;;  %v731_v53 = vadd.f32 %v730_v32, %v729_v44  ;;  %v739_v54 = vadd.f32 %v738_v1, %v737_v48 }
 0x3cb   : > { %v680_v41 = vadd.f32 %v679_v27, %v678_v29  ;;  %v725_v2 = vrot.slane %v724_v50, 1  ;;  %v732_v55 = vrot.slane %v731_v53, 1  ;;  %v740_v36 = vrot.slane %v739_v54, 1 }
 0x3cd   : > { %681 = vadd.xlane.f32.xlu0 %v680_v41  ;;  %v726_v56 = vadd.f32 %v725_v2, %v724_v50  ;;  %v733_v3 = vadd.f32 %v732_v55, %v731_v53  ;;  %v741_v57 = vadd.f32 %v740_v36, %v739_v54 }
 0x3cf   : > { %v745_v61 = vrot.slane %v733_v3, 7  ;;  %v746_v62 = vrot.slane %v741_v57, 6 }
 0x3d1   : > { %v747_v63 = vsel %vm434_vm2, %v726_v56, %v745_v61 }
 0x3d2   : > { %v748_v4 = vsel %vm467_vm7, %v747_v63, %v746_v62 }
 0x3d3   : > { %v750_v5 = vsel %vm429_vm1, %v748_v4, 0.0  ;;  %vm774_vm1 = vcmp.eq.s32.totalorder %v1610_v42, 2 }
 0x3d4   : > { %v752_v7 = vperm.slane %v750_v5, 0  ;;  %v753_v8 = vperm.slane %v750_v5, 1  ;;  %v754_v9 = vperm.slane %v750_v5, 2  ;;  %v777_v21 = vsel %vm774_vm1, %v776_v52, 0.0 }
 0x3d6   : > { %v758_v10 = vsel %vm434_vm2, %v752_v7, 0.0  ;;  %v759_v11 = vsel %vm434_vm2, %v753_v8, 0.0  ;;  %v761_v12 = vsel %vm437_vm3, %v754_v9, 0.0  ;;  %vm773_vm2 = vcmp.eq.s32.totalorder %v1610_v42, 1 }
 0x3d7   : > { %v760_v13 = vadd.f32 %v759_v11, %v758_v10  ;;  %vm772_vm3 = vcmp.eq.s32.totalorder %v1610_v42, 0 }
 0x3d9   : > { %v762_v14 = vadd.f32 %v761_v12, %v760_v13 }
 0x3db   : > { %763 = vadd.xlane.f32.xlu0 %v762_v14 }
 0x440   : > { %v682_v15 = vpop.xlane.xlu0 %681 }
 0x441   : > { %v683_v16 = vrot.slane %v682_v15, 4 }
 0x443   : > { %v684_v17 = vadd.f32 %v683_v16, %v682_v15 }
 0x445   : > { %v685_v18 = vrot.slane %v684_v17, 2 }
 0x447   : > { %v686_v0 = vadd.f32 %v685_v18, %v684_v17 }
 0x449   : > { %v687_v19 = vrot.slane %v686_v0, 1 }
 0x44b   : > { %v688_v34 = vadd.f32 %v687_v19, %v686_v0 }
 0x44d   : > { %994 = vpush %v688_v34 }
 0x44e   : > { %v764_v20 = vpop.xlane.xlu0 %763 }
 0x44f   : > { %v765_v39 = vrot.slane %v764_v20, 4 }
 0x451   : > { %v766_v43 = vadd.f32 %v765_v39, %v764_v20 }
 0x453   : > { %v767_v30 = vrot.slane %v766_v43, 2 }
 0x455   : > { %v768_v58 = vadd.f32 %v767_v30, %v766_v43 }
 0x457   : > { %v769_v59 = vrot.slane %v768_v58, 1 }
 0x459   : > { %v770_v60 = vadd.f32 %v769_v59, %v768_v58 }
 0x45b   : > { %996 = vpush %v770_v60 }
 0x47e   : > { %s995_s7 = spop %994 }
 0x47f   : > { %v778_v22 = vstv %s995_s7 }
 0x480   : > { %v779_v6 = vsel %vm773_vm2, %v778_v22, %v777_v21 }
 0x48c   : > { %s997_s19 = spop %996 }
 0x48d   : > { %v780_v45 = vstv %s997_s19 }
 0x48e   : > { %v781_v49 = vsel %vm772_vm3, %v780_v45, %v779_v6 }
 0x48f   : > { %782 = vst [vmem:[%s1671_s21] sm:$0xff] %v781_v49 }
 0x490   : > { %1269 = shalt.err (!%p1266_p0)
}
 0x491   : > { %1006 = dma.vmem_to_hbm [thread:$0]  (%p1440_p11), %s797_s30, 128, %s799_s11, %s784_s9  }
 0x492 PF: > { %s810_s28 = sand.u32 1, %s1328_s15   ;;  %p1962_p1 = scmp.ge.s32.totalorder %s1340_s18, 2 }
 0x493   : > { %s811_s21 = scalar_lea.sflag [#allocation4], %s810_s28 }
 0x494   : > { %p1022_p4 = pnand %p1962_p1, %p1444_p12 }
 0x496   : > { %p1023_p5 = pneg %p1022_p4 }
 0x498   : > { %1323 = dma.done.wait (%p1023_p5), %s811_s21, 128  }
 0x499   : > { %1325 = vsyncadd (%p1023_p5), %s811_s21, 4294967168  ;;  %s1963_s18 = sld [smem:[#allocation16_spill]]  ;;  %s1966_s15 = smov %s1332_s16 }
 0x49a   : > { %s1964_s5 = sld [smem:[#allocation15_spill]] }
 0x49b   : > { %s1965_s17 = sld [smem:[#allocation17_spill]] }
 0x49f   : > { %p23_p6 = scmp.ge.s32.totalorder %s1963_s18, 4  }
 0x4a0   : > { %s1967_s16 = smov %s1964_s5 }
 0x4a1   :  { %25 = sbr.rel (!%p23_p6) target bundleno = 12 (0xc), region = 155 }
 0x4a6   :  { %817 = vsyncpa [#allocation3], 1 }
 0x4a7   :  { %819 = vsyncpa [#allocation3 + $0x1], 1 }
 0x4a8   :  { %820 = vsyncpa [#allocation6], 1 }
 0x4a9   :  { %822 = vsyncpa [#allocation6 + $0x1], 1 }
 0x4aa   :  { %823 = vsyncpa [#allocation9], 1 }
 0x4ab   :  { %825 = vsyncpa [#allocation9 + $0x1], 1 }
 0x4ac   :  { %826 = vsyncpa [#allocation4], 1 }
 0x4ad   :  { %828 = vsyncpa [#allocation4 + $0x1], 1 }

</bundles_post_ra>
